<compile_context>
chip_gen: v5e
topology: v5e:2x2
jax: 0.10.0
libtpu: 0.0.40
codegen_flags: <defaults>
</compile_context>

<pallas_src>
import math

import jax
import jax.numpy as jnp
from jax.experimental import pallas as pl
from jax.experimental.pallas import tpu as pltpu

# ----------------------------------------------------------------------------
# HashGrid encoding (tcnn-style), plain JAX.
# TODO(synk): the data-dependent hash-table gathers (jnp.take from per-level
# tables of up to 2^19 entries) have no clean Pallas TPU equivalent here; the
# encoding runs in plain JAX and only the MLP backbone is a Pallas kernel.
# It emits bf16 features already in the (32, M) layout the kernel wants, so
# no extra cast / transpose pass is inserted between encode and MLP.
# ----------------------------------------------------------------------------

N_LEVELS = 16
N_FEATURES_PER_LEVEL = 2
LOG2_HASHMAP_SIZE = 19
BASE_RESOLUTION = 16
PER_LEVEL_SCALE = 1.3819
N_DIMS = 4  # xyzt encoder: 4 input dims (3 coords + 1 latent)

_PRIMES = jnp.array([1, 2654435761, 805459861, 3674653429], dtype=jnp.uint32)


def _level_scale(level: int) -> float:
    return 2.0 ** (level * math.log2(PER_LEVEL_SCALE)) * BASE_RESOLUTION - 1.0


def _level_resolution(level: int) -> int:
    return int(math.ceil(_level_scale(level))) + 1


def _level_table_size(level: int):
    res = _level_resolution(level)
    dense = res ** N_DIMS
    hashmap = 2 ** LOG2_HASHMAP_SIZE
    return min(dense, hashmap), dense <= hashmap


def hashgrid_encode(x, tables):
    """x: (M, 4) float32 in [0, 1].  tables: list of (T_l, 2) float32 arrays.

    Returns features TRANSPOSED as (32, M) bf16 -- points on lanes -- which is
    exactly the layout/dtype the Pallas MLP kernel consumes (the bf16 cast is
    fused into the per-level einsum rather than a standalone HBM pass).
    """
    corners = jnp.array(
        [[(c >> d) & 1 for d in range(N_DIMS)] for c in range(2 ** N_DIMS)],
        dtype=jnp.uint32)                                        # (16, 4)
    feats = []
    for level in range(N_LEVELS):
        scale = _level_scale(level)
        res = _level_resolution(level)
        table_size, is_dense = _level_table_size(level)

        pos = x * scale + 0.5
        pos_floor = jnp.floor(pos)
        frac = pos - pos_floor                                   # (M, 4)
        grid = pos_floor.astype(jnp.uint32)                      # (M, 4)
        corner_pos = grid[:, None, :] + corners[None, :, :]      # (M, 16, 4)

        if is_dense:
            # NOTE: at x exactly == 1 a corner coordinate can equal `res`; the
            # `% table_size` wrap aliases it into a neighboring cell (tiny
            # boundary effect, kept for defined/in-range indexing).
            strides = jnp.array([res ** d for d in range(N_DIMS)],
                                dtype=jnp.uint32)
            idx = jnp.sum(corner_pos * strides[None, None, :], axis=-1)
        else:
            h = corner_pos * _PRIMES[None, None, :]
            idx = h[..., 0] ^ h[..., 1] ^ h[..., 2] ^ h[..., 3]
        idx = (idx % jnp.uint32(table_size)).astype(jnp.int32)   # (M, 16)

        w = jnp.where(corners[None, :, :] == 1,
                      frac[:, None, :], 1.0 - frac[:, None, :])
        w = jnp.prod(w, axis=-1)                                 # (M, 16)
        vals = jnp.take(tables[level], idx, axis=0)              # (M, 16, 2)
        feats.append(
            jnp.einsum('mc,mcf->fm', w, vals).astype(jnp.bfloat16))  # (2, M)
    return jnp.concatenate(feats, axis=0)                        # (32, M) bf16


# ----------------------------------------------------------------------------
# Fused MLP backbone Pallas kernel (transposed / lane-dense):
#   Linear(32,64)+ReLU -> Linear(64,64)+ReLU -> Linear(64,1)
# Operands:  x (32,tm) bf16, W1 (64,32) bf16, W2 (64,64) bf16 (torch (out,in)
# layout works directly as h = W @ x), aux (64,3) f32 = [b1|b2|w3] packed,
# b3 scalar in SMEM.  Output block is (1, tm): lane-dense, no masked stores.
# ----------------------------------------------------------------------------

def mlp_kernel(x_ref, w1_ref, w2_ref, aux_ref, b3_ref, o_ref):
    b1 = aux_ref[:, 0:1]                                         # (64,1) f32
    b2 = aux_ref[:, 1:2]                                         # (64,1) f32
    w3 = aux_ref[:, 2:3]                                         # (64,1) f32
    # Layer 1: (64,32)bf16 @ (32,tm)bf16 -> (64,tm) f32 accumulate.
    h = jnp.dot(w1_ref[...], x_ref[...], preferred_element_type=jnp.float32)
    h = jnp.maximum(h + b1, 0.0)                                 # f32 VPU
    # Layer 2: (64,64)bf16 @ (64,tm)bf16 -> (64,tm) f32 accumulate.
    h = jnp.dot(w2_ref[...], h.astype(jnp.bfloat16),
                preferred_element_type=jnp.float32)
    h = jnp.maximum(h + b2, 0.0)                                 # f32 VPU
    # Layer 3 (64 -> 1): VPU multiply + sublane reduce; skip the MXU matvec.
    o_ref[...] = (jnp.sum(h * w3, axis=0, keepdims=True)
                  + b3_ref[0, 0])                                # (1, tm)


def _choose_tile(m, cap=16384):
    """Largest lane-aligned tile up to `cap` (amortizes ~0.35us/step grid
    overhead; per-tile VMEM stays well under the 32 MiB limit below).  If the
    grid takes more than one step, round the step count up to an even number
    so the two v7x TensorCores get identical work under
    dimension_semantics=("parallel",).  Neutral on v5e/v6e (serial grid)."""
    mp = pl.cdiv(m, 128) * 128
    tm = min(cap, mp)
    steps = pl.cdiv(mp, tm)
    if steps > 1 and steps % 2 == 1:
        tm = pl.cdiv(pl.cdiv(mp, steps + 1), 128) * 128
    return tm


def mlp_backbone(feats_t, params, tm):
    """feats_t: (32, Mp) bf16 (already padded to a multiple of tm) -> (Mp,)."""
    c_in, Mp = feats_t.shape
    assert Mp % tm == 0
    w1, b1, w2, b2, w3, b3 = params      # torch-style (out,in) weights
    H = w1.shape[0]

    w1b = w1.astype(jnp.bfloat16)
    w2b = w2.astype(jnp.bfloat16)
    # Pack b1 / b2 / w3 into one (H, 3) f32 operand; b3 is an SMEM scalar.
    aux = jnp.concatenate(
        [b1.reshape(H, 1), b2.reshape(H, 1), w3.reshape(H, 1)],
        axis=1).astype(jnp.float32)
    b3c = b3.reshape(1, 1).astype(jnp.float32)

    flops = 2 * Mp * (c_in * H + H * H + H)
    bytes_accessed = (feats_t.size * 2 + Mp * 4
                      + w1b.size * 2 + w2b.size * 2
                      + 4 * (aux.size + b3c.size))

    out = pl.pallas_call(
        mlp_kernel,
        out_shape=jax.ShapeDtypeStruct((1, Mp), jnp.float32),
        grid_spec=pltpu.PrefetchScalarGridSpec(
            num_scalar_prefetch=0,
            grid=(Mp // tm,),
            in_specs=[
                pl.BlockSpec((c_in, tm), lambda i: (0, i)),   # features tile
                pl.BlockSpec((H, c_in), lambda i: (0, 0)),    # W1
                pl.BlockSpec((H, H), lambda i: (0, 0)),       # W2
                pl.BlockSpec((H, 3), lambda i: (0, 0)),       # [b1|b2|w3]
                pl.BlockSpec(memory_space=pltpu.MemorySpace.SMEM),  # b3
            ],
            out_specs=pl.BlockSpec((1, tm), lambda i: (0, i)),  # lane-dense
        ),
        compiler_params=pltpu.CompilerParams(
            dimension_semantics=("parallel",),
            vmem_limit_bytes=32 * 1024 * 1024),
        cost_estimate=pl.CostEstimate(
            flops=flops, transcendentals=0, bytes_accessed=bytes_accessed),
    )(feats_t, w1b, w2b, aux, b3c)
    return out[0]


# ----------------------------------------------------------------------------
# Full NGP forward
# ----------------------------------------------------------------------------

def ngp_forward(inputs, latent, tables, mlp_params):
    B, N, _ = inputs.shape
    inputs_con = jnp.repeat(latent[:, None, :], N, axis=1)       # (B, N, din)
    x = jnp.concatenate([inputs, inputs_con], axis=-1)           # (B, N, 4)
    x = (x + 1.0) / 2.0
    x = x.reshape(-1, 4)                                         # (M, 4)
    M = x.shape[0]

    tm = _choose_tile(M)
    Mp = pl.cdiv(M, tm) * tm
    if Mp != M:
        # Pad the cheap (M,4) coordinate array (16 B/pt) BEFORE encoding so
        # the (32, Mp) feature matrix never needs a separate jnp.pad pass.
        x = jnp.pad(x, ((0, Mp - M), (0, 0)))

    feats_t = hashgrid_encode(x, tables)                         # (32, Mp) bf16
    out = mlp_backbone(feats_t, mlp_params, tm)                  # (Mp,)
    return out[:M].reshape(B, N, 1)


# ----------------------------------------------------------------------------
# Deterministic parameter init + run
# ----------------------------------------------------------------------------

if __name__ == "__main__":
    key = jax.random.PRNGKey(0)
    B, N = 2, 64
    latent_size = 1        # latent_size + xyz_dim(3) = 4 matches reshape(-1, 4)

    k_in, k_lat, k_tab, k_w = jax.random.split(key, 4)
    inputs = jax.random.uniform(k_in, (B, N, 3), minval=-1.0, maxval=1.0,
                                dtype=jnp.float32)
    latent = jax.random.uniform(k_lat, (B, latent_size), minval=-1.0,
                                maxval=1.0, dtype=jnp.float32)

    # HashGrid tables (tcnn default init: U[-1e-4, 1e-4]).
    tkeys = jax.random.split(k_tab, N_LEVELS)
    tables = []
    for level in range(N_LEVELS):
        tsize, _ = _level_table_size(level)
        tables.append(jax.random.uniform(
            tkeys[level], (tsize, N_FEATURES_PER_LEVEL),
            minval=-1e-4, maxval=1e-4, dtype=jnp.float32))

    # Backbone params (PyTorch nn.Linear default uniform init, (out,in) layout).
    def linear_init(k, fan_in, fan_out):
        kw, kb = jax.random.split(k)
        bound = 1.0 / math.sqrt(fan_in)
        w = jax.random.uniform(kw, (fan_out, fan_in), minval=-bound,
                               maxval=bound, dtype=jnp.float32)
        b = jax.random.uniform(kb, (fan_out, 1), minval=-bound,
                               maxval=bound, dtype=jnp.float32)
        return w, b

    kw1, kw2, kw3 = jax.random.split(k_w, 3)
    w1, b1 = linear_init(kw1, 32, 64)
    w2, b2 = linear_init(kw2, 64, 64)
    w3, b3 = linear_init(kw3, 64, 1)
    mlp_params = (w1, b1, w2, b2, w3, b3)

    out = jax.block_until_ready(ngp_forward(inputs, latent, tables, mlp_params))
    assert out.shape == (B, N, 1), out.shape
    assert out.dtype == jnp.float32
    print("KERNEL_OK")
</pallas_src>

<mosaic_0001>
module attributes {stable_mosaic.version = 11 : i64} {
  func.func @mlp_kernel(%arg0: i32, %arg1: memref<32x128xbf16, #tpu.memory_space<vmem>>, %arg2: memref<64x32xbf16, #tpu.memory_space<vmem>>, %arg3: memref<64x64xbf16, #tpu.memory_space<vmem>>, %arg4: memref<64x3xf32, #tpu.memory_space<vmem>>, %arg5: memref<1x1xf32, #tpu.memory_space<smem>>, %arg6: memref<1x128xf32, #tpu.memory_space<vmem>>) attributes {dimension_semantics = [#tpu.dimension_semantics<parallel>], iteration_bounds = array<i64: 1>, scalar_prefetch = 0 : i64, scratch_operands = 0 : i64, tpu.core_type = #tpu.core_type<tc>, window_params = [{transform_indices = @transform_0, window_bounds = array<i64: 32, 128>}, {pipeline_mode = #tpu.pipeline_mode<synchronous>, transform_indices = @transform_1, window_bounds = array<i64: 64, 32>}, {pipeline_mode = #tpu.pipeline_mode<synchronous>, transform_indices = @transform_2, window_bounds = array<i64: 64, 64>}, {pipeline_mode = #tpu.pipeline_mode<synchronous>, transform_indices = @transform_3, window_bounds = array<i64: 64, 3>}, {transform_indices = @transform_4, window_bounds = array<i64: 1, 1>}, {transform_indices = @transform_5, window_bounds = array<i64: 1, 128>}]} {
    %c0 = arith.constant 0 : index
    %c0_0 = arith.constant 0 : index
    %0 = vector.load %arg4[%c0, %c0_0] : memref<64x3xf32, #tpu.memory_space<vmem>>, vector<64x1xf32>
    %c0_1 = arith.constant 0 : index
    %c1 = arith.constant 1 : index
    %1 = vector.load %arg4[%c0_1, %c1] : memref<64x3xf32, #tpu.memory_space<vmem>>, vector<64x1xf32>
    %c0_2 = arith.constant 0 : index
    %c2 = arith.constant 2 : index
    %2 = vector.load %arg4[%c0_2, %c2] : memref<64x3xf32, #tpu.memory_space<vmem>>, vector<64x1xf32>
    %c0_3 = arith.constant 0 : index
    %c0_4 = arith.constant 0 : index
    %3 = vector.load %arg2[%c0_3, %c0_4] : memref<64x32xbf16, #tpu.memory_space<vmem>>, vector<64x32xbf16>
    %c0_5 = arith.constant 0 : index
    %c0_6 = arith.constant 0 : index
    %4 = vector.load %arg1[%c0_5, %c0_6] : memref<32x128xbf16, #tpu.memory_space<vmem>>, vector<32x128xbf16>
    %cst = arith.constant dense<0.000000e+00> : vector<64x128xf32>
    %5 = tpu.matmul %3, %4, %cst {dimension_numbers = #tpu.dot_dimension_numbers<[1], [0], [0], [1], [0, 0, 1, 1], [], []>} : vector<64x32xbf16>, vector<32x128xbf16>, vector<64x128xf32> -> vector<64x128xf32>
    %6 = vector.broadcast %0 : vector<64x1xf32> to vector<64x128xf32>
    %7 = arith.addf %5, %6 : vector<64x128xf32>
    %cst_7 = arith.constant 0.000000e+00 : f32
    %8 = vector.broadcast %cst_7 : f32 to vector<64x128xf32>
    %9 = arith.maximumf %7, %8 : vector<64x128xf32>
    %c0_8 = arith.constant 0 : index
    %c0_9 = arith.constant 0 : index
    %10 = vector.load %arg3[%c0_8, %c0_9] : memref<64x64xbf16, #tpu.memory_space<vmem>>, vector<64x64xbf16>
    %11 = arith.truncf %9 : vector<64x128xf32> to vector<64x128xbf16>
    %cst_10 = arith.constant dense<0.000000e+00> : vector<64x128xf32>
    %12 = tpu.matmul %10, %11, %cst_10 {dimension_numbers = #tpu.dot_dimension_numbers<[1], [0], [0], [1], [0, 0, 1, 1], [], []>} : vector<64x64xbf16>, vector<64x128xbf16>, vector<64x128xf32> -> vector<64x128xf32>
    %13 = vector.broadcast %1 : vector<64x1xf32> to vector<64x128xf32>
    %14 = arith.addf %12, %13 : vector<64x128xf32>
    %cst_11 = arith.constant 0.000000e+00 : f32
    %15 = vector.broadcast %cst_11 : f32 to vector<64x128xf32>
    %16 = arith.maximumf %14, %15 : vector<64x128xf32>
    %17 = vector.broadcast %2 : vector<64x1xf32> to vector<64x128xf32>
    %18 = arith.mulf %16, %17 : vector<64x128xf32>
    %cst_12 = arith.constant dense<0.000000e+00> : vector<128xf32>
    %19 = vector.multi_reduction <add>, %18, %cst_12 [0] : vector<64x128xf32> to vector<128xf32>
    %20 = vector.shape_cast %19 : vector<128xf32> to vector<1x128xf32>
    %c0_13 = arith.constant 0 : index
    %c0_14 = arith.constant 0 : index
    %21 = memref.load %arg5[%c0_13, %c0_14] : memref<1x1xf32, #tpu.memory_space<smem>>
    %22 = vector.broadcast %21 : f32 to vector<1x128xf32>
    %23 = arith.addf %20, %22 : vector<1x128xf32>
    %c0_15 = arith.constant 0 : index
    %c0_16 = arith.constant 0 : index
    %24 = vector.load %arg6[%c0_15, %c0_16] : memref<1x128xf32, #tpu.memory_space<vmem>>, vector<1x128xf32>
    tpu.vector_store %arg6[%c0_15, %c0_16], %23 {strides = array<i32>} : memref<1x128xf32, #tpu.memory_space<vmem>>, vector<1x128xf32>,
    return
  }
  func.func @transform_0(%arg0: i32) -> (i32, i32) {
    %c0_i32 = arith.constant 0 : i32
    %c0_i32_0 = arith.constant 0 : i32
    return %c0_i32, %arg0 : i32, i32
  }
  func.func @transform_1(%arg0: i32) -> (i32, i32) {
    %c0_i32 = arith.constant 0 : i32
    %c0_i32_0 = arith.constant 0 : i32
    %c0_i32_1 = arith.constant 0 : i32
    return %c0_i32, %c0_i32_0 : i32, i32
  }
  func.func @transform_2(%arg0: i32) -> (i32, i32) {
    %c0_i32 = arith.constant 0 : i32
    %c0_i32_0 = arith.constant 0 : i32
    %c0_i32_1 = arith.constant 0 : i32
    return %c0_i32, %c0_i32_0 : i32, i32
  }
  func.func @transform_3(%arg0: i32) -> (i32, i32) {
    %c0_i32 = arith.constant 0 : i32
    %c0_i32_0 = arith.constant 0 : i32
    %c0_i32_1 = arith.constant 0 : i32
    return %c0_i32, %c0_i32_0 : i32, i32
  }
  func.func @transform_4(%arg0: i32) -> (i32, i32) {
    %c0_i32 = arith.constant 0 : i32
    %c0_i32_0 = arith.constant 0 : i32
    %c0_i32_1 = arith.constant 0 : i32
    return %c0_i32, %c0_i32_0 : i32, i32
  }
  func.func @transform_5(%arg0: i32) -> (i32, i32) {
    %c0_i32 = arith.constant 0 : i32
    %c0_i32_0 = arith.constant 0 : i32
    return %c0_i32, %arg0 : i32, i32
  }
}

</mosaic_0001>

<bundles_post_ra>
// kernel: tpu_custom_call.1
= control target key start
LH: loop header
LB: loop body
LE: loop exit
PB: predicated region body
PF: predicated region fallthrough
CT: control target
= control target key end

     0   :  { %v459_v1 = vmov 0   ;;  %s572_s0 = inlined_call_operand.vmem [shape: bf16[32,128], index: 0, kind: input, shape index: {}]   ;;  %s573_s1 = inlined_call_operand.vmem [shape: bf16[64,32], index: 1, kind: input, shape index: {}]   ;;  %s574_s2 = inlined_call_operand.vmem [shape: bf16[64,64], index: 2, kind: input, shape index: {}]   ;;  %s575_s3 = inlined_call_operand.vmem [shape: f32[64,3], index: 3, kind: input, shape index: {}]   ;;  %s576_s4 = inlined_call_operand.<no memory space> [shape: f32[1,1], index: 4, kind: input, shape index: {}]   ;;  %s577_s5 = inlined_call_operand.hbm [shape: f32[1,128], index: 5, kind: output, shape index: {}]  }
   0x1   :  { %v405_v0 = vld [vmem:[%s572_s0 + $0x8] sm:$0xff]  ;;  %421 = vset.pattern.permute.xlu1 %v459_v1  ;;  %420 = vset.pattern.permute.xlu0 %v459_v1  ;;  %v404_v2 = vld [vmem:[%s572_s0] sm:$0xff] }
   0x2   :  { %410 = vmatpush.bf16.msra.mxu3 %v405_v0  ;;  %134 = vmatpush.bf16.msra.mxu0 %v405_v0 }
   0x3   :  { %11 = vsyncpa [#allocation4], 0  ;;  %422 = vset.pattern.permute.xlu2 %v459_v1  ;;  %v401_v3 = vld [vmem:[%s573_s1 + $0x8] sm:$0xff]  ;;  %v400_v4 = vld [vmem:[%s573_s1] sm:$0xff]  ;;  %vm115_vm0 = vcmask 261120   ;;  %v460_v19 = vmov 1  }
   0x4   :  { %v510_v5 = vld [vmem:[%s575_s3 + $0x30] sm:$0xff]  ;;  %v27_v6 = vld [vmem:[%s575_s3 + $0x20] sm:$0xff]  ;;  %v522_v8 = vld [vmem:[%s575_s3 + $0x38] sm:$0xff]  ;;  %v461_v24 = vmov 2   ;;  %vm229_vm1 = vcmask 523264   ;;  %s462_s0 = smov [#allocation3]  }
   0x5   :  { %75 = vperm.xlu0 %420, %v510_v5   ;;  %65 = vperm.xlu1 %421, %v27_v6   ;;  %v25_v7 = vld [vmem:[%s575_s3 + $0x10] sm:$0xff]  ;;  %v527_v9 = vld [vmem:[%s575_s3 + $0x28] sm:$0xff]  ;;  %v26_v10 = vld [vmem:[%s575_s3 + $0x18] sm:$0xff]  ;;  %s341_s27 = sshll.u32 %s462_s0, 4  ;;  %s343_s30 = sshll.u32 %s577_s5, 4  ;;  %s342_s27 = int_to_ptr.vmem [resolvable:$true] %s341_s27  ;;  %s344_s30 = int_to_ptr.hbm [resolvable:$true] %s343_s30 }
   0x6   :  { %411 = vmatpush.bf16.msra.mxu3 %v404_v2  ;;  %135 = vmatpush.bf16.msra.mxu0 %v404_v2  ;;  %v402_v11 = vld [vmem:[%s573_s1 + $0x10] sm:$0xff]  ;;  %v24_v12 = vld [vmem:[%s575_s3 + $0x8] sm:$0xff]  ;;  %v23_v13 = vld [vmem:[%s575_s3] sm:$0xff] }
   0x7   :  { %55 = vperm.xlu2 %422, %v25_v7   ;;  %v403_v14 = vld [vmem:[%s573_s1 + $0x18] sm:$0xff]  ;;  %v406_v53 = vld [vmem:[%s574_s2] sm:$0xff]  ;;  %v408_v54 = vld [vmem:[%s574_s2 + $0x10] sm:$0xff] }
   0x8   :  { %v407_v55 = vld [vmem:[%s574_s2 + $0x8] sm:$0xff]  ;;  %v409_v56 = vld [vmem:[%s574_s2 + $0x18] sm:$0xff] }
   0x9   :  { %377 = vmatmul.msk.bf16.vlgmr.msra.gmra.mxu3 %vm115_vm0, %v401_v3  ;;  %376 = vmatmul.msk.bf16.vlgmr.msra.gmra.mxu0 %vm115_vm0, %v400_v4 }
   0xd   :  { %80 = vperm.xlu0 %420, %v522_v8   ;;  %70 = vperm.xlu1 %421, %v527_v9  }
   0xf   :  { %60 = vperm.xlu2 %422, %v26_v10  }
  0x15   :  { %50 = vperm.xlu1 %421, %v24_v12   ;;  %45 = vperm.xlu0 %420, %v23_v13  }
  0x17   :  { %423 = vset.pattern.permute.xlu2 %v460_v19 }
  0x18   :  { %178 = vperm.xlu2 %423, %v23_v13  }
  0x19   :  { %378 = vmatmul.msk.bf16.gmra.mxu3 %vm115_vm0, %v402_v11 }
  0x1d   :  { %425 = vset.pattern.permute.xlu1 %v460_v19  ;;  %424 = vset.pattern.permute.xlu0 %v460_v19 }
  0x1e   :  { %186 = vperm.xlu1 %425, %v25_v7   ;;  %182 = vperm.xlu0 %424, %v24_v12  }
  0x20   :  { %190 = vperm.xlu2 %423, %v26_v10  }
  0x26   :  { %194 = vperm.xlu1 %425, %v27_v6   ;;  %427 = vset.pattern.permute.xlu0 %v461_v24 }
  0x27   :  { %284 = vperm.xlu0 %427, %v24_v12  }
  0x28   :  { %426 = vset.pattern.permute.xlu2 %v461_v24 }
  0x29   :  { %379 = vmatmul.msk.bf16.gmra.mxu3 %vm115_vm0, %v403_v14  ;;  %280 = vperm.xlu2 %426, %v23_v13  }
  0x2e   :  { %428 = vset.pattern.permute.xlu1 %v461_v24 }
  0x2f   :  { %288 = vperm.xlu1 %428, %v25_v7   ;;  %296 = vperm.xlu0 %427, %v27_v6  }
  0x31   :  { %429 = vset.pattern.permute.xlu2 %v460_v19 }
  0x32   :  { %198 = vperm.xlu2 %429, %v527_v9  }
  0x37   :  { %292 = vperm.xlu1 %428, %v26_v10   ;;  %304 = vperm.xlu0 %427, %v510_v5  }
  0x3a   :  { %202 = vperm.xlu2 %429, %v510_v5  }
  0x3f   :  { %430 = vset.pattern.permute.xlu1 %v460_v19 }
  0x40   :  { %206 = vperm.xlu1 %430, %v522_v8  }
  0x42   :  { %431 = vset.pattern.permute.xlu2 %v461_v24 }
  0x43   :  { %300 = vperm.xlu2 %431, %v527_v9  }
  0x48   :  { %432 = vset.pattern.permute.xlu1 %v461_v24 }
  0x49   :  { %308 = vperm.xlu1 %432, %v522_v8  }
  0x61   :  { %v56_v22 = vpop.permute.xlu2 %55 }
  0x69   :  { %v61_v32 = vpop.permute.xlu2 %60 }
  0x72   :  { %v179_v57 = vpop.permute.xlu2 %178 }
  0x77   :  { %v66_v20 = vpop.permute.xlu1 %65  ;;  %v76_v21 = vpop.permute.xlu0 %75 }
  0x7a   :  { %v191_v59 = vpop.permute.xlu2 %190 }
  0x7f   :  { %v71_v25 = vpop.permute.xlu1 %70  ;;  %v81_v27 = vpop.permute.xlu0 %80 }
  0x83   :  { %v281_v61 = vpop.permute.xlu2 %280 }
  0x86   :  { %v137_v26 = vpop.f32.mrf.mxu0 }
  0x87   :  { %v51_v38 = vpop.permute.xlu1 %50  ;;  %v46_v41 = vpop.permute.xlu0 %45 }
  0x88   :  { %v138_v46 = vadd.f32 %v137_v26, %v46_v41 }
  0x8a   :  { %v157_v50 = vmax.f32 %v138_v46, 0.0 }
  0x8c   :  { %v142_v15 = vpop.f32.mrf.mxu3  ;;  %v199_v3 = vpop.permute.xlu2 %198 }
  0x8d   :  { %v143_v42 = vadd.f32 %v142_v15, %v56_v22 }
  0x8e   :  { %v139_v40 = vpop.f32.mrf.mxu0 }
  0x8f   :  { %v140_v45 = vadd.f32 %v139_v40, %v51_v38  ;;  %v159_v48 = vmax.f32 %v143_v42, 0.0 }
  0x90   :  { %v187_v58 = vpop.permute.xlu1 %186  ;;  %v183_v63 = vpop.permute.xlu0 %182 }
  0x91   :  { %v158_v49 = vmax.f32 %v140_v45, 0.0 }
  0x93   :  { %v173_v52 = vpack.c.bf16 %v158_v49, %v157_v50 }
  0x94   :  { %v144_v16 = vpop.f32.mrf.mxu3  ;;  %v203_v12 = vpop.permute.xlu2 %202 }
  0x95   :  { %v145_v36 = vadd.f32 %v144_v16, %v61_v32 }
  0x97   :  { %v160_v44 = vmax.f32 %v145_v36, 0.0 }
  0x98   :  { %v195_v60 = vpop.permute.xlu1 %194 }
  0x99   :  { %v174_v51 = vpack.c.bf16 %v160_v44, %v159_v48  ;;  %v285_v4 = vpop.permute.xlu0 %284 }
  0x9c   :  { %v147_v17 = vpop.f32.mrf.mxu3 }
  0x9d   :  { %v148_v33 = vadd.f32 %v147_v17, %v66_v20  ;;  %v301_v32 = vpop.permute.xlu2 %300 }
  0x9f   :  { %v161_v43 = vmax.f32 %v148_v33, 0.0 }
  0xa1   :  { %v289_v0 = vpop.permute.xlu1 %288 }
  0xa4   :  { %v149_v18 = vpop.f32.mrf.mxu3 }
  0xa5   :  { %v150_v30 = vadd.f32 %v149_v18, %v71_v25  ;;  %v297_v18 = vpop.permute.xlu0 %296 }
  0xa7   :  { %v162_v37 = vmax.f32 %v150_v30, 0.0 }
  0xa9   :  { %v175_v47 = vpack.c.bf16 %v162_v37, %v161_v43  ;;  %v293_v7 = vpop.permute.xlu1 %292 }
  0xac   :  { %v152_v23 = vpop.f32.mrf.mxu3 }
  0xad   :  { %v153_v28 = vadd.f32 %v152_v23, %v76_v21  ;;  %v305_v41 = vpop.permute.xlu0 %304 }
  0xaf   :  { %v163_v34 = vmax.f32 %v153_v28, 0.0 }
  0xb2   :  { %v207_v20 = vpop.permute.xlu1 %206 }
  0xb4   :  { %v154_v29 = vpop.f32.mrf.mxu3 }
  0xb5   :  { %v155_v31 = vadd.f32 %v154_v29, %v81_v27 }
  0xb7   :  { %v164_v35 = vmax.f32 %v155_v31, 0.0 }
  0xb9   :  { %v176_v39 = vpack.c.bf16 %v164_v35, %v163_v34 }
  0xbb   :  { %246 = vmatpush.bf16.msra.mxu1 %v176_v39  ;;  %412 = vmatpush.bf16.msra.mxu2 %v176_v39  ;;  %v309_v42 = vpop.permute.xlu1 %308 }
  0xbf   :  { %247 = vmatpush.bf16.msra.mxu1 %v175_v47  ;;  %413 = vmatpush.bf16.msra.mxu2 %v175_v47 }
  0xc3   :  { %248 = vmatpush.bf16.msra.mxu1 %v174_v51  ;;  %414 = vmatpush.bf16.msra.mxu2 %v174_v51 }
  0xc7   :  { %249 = vmatpush.bf16.msra.mxu1 %v173_v52  ;;  %415 = vmatpush.bf16.msra.mxu2 %v173_v52 }
  0xca   :  { %396 = vmatmul.msk.bf16.vlgmr.msra.gmra.mxu1 %vm229_vm1, %v406_v53  ;;  %398 = vmatmul.msk.bf16.vlgmr.msra.gmra.mxu2 %vm229_vm1, %v408_v54  ;;  %v333_v53 = vstv %s576_s4 }
  0xda   :  { %397 = vmatmul.msk.bf16.gmra.mxu1 %vm229_vm1, %v407_v55  ;;  %399 = vmatmul.msk.bf16.gmra.mxu2 %vm229_vm1, %v409_v56 }
 0x147   :  { %v251_v62 = vpop.f32.mrf.mxu1 }
 0x148   :  { %v252_v9 = vadd.f32 %v251_v62, %v179_v57 }
 0x14a   :  { %v271_v13 = vmax.f32 %v252_v9, 0.0 }
 0x14c   :  { %v311_v21 = vmul.f32 %v281_v61, %v271_v13 }
 0x14d   :  { %v261_v1 = vpop.f32.mrf.mxu2 }
 0x14e   :  { %v262_v16 = vadd.f32 %v261_v1, %v195_v60 }
 0x14f   :  { %v253_v2 = vpop.f32.mrf.mxu1 }
 0x150   :  { %v254_v6 = vadd.f32 %v253_v2, %v183_v63  ;;  %v275_v25 = vmax.f32 %v262_v16, 0.0 }
 0x152   :  { %v272_v11 = vmax.f32 %v254_v6, 0.0  ;;  %v315_v34 = vmul.f32 %v297_v18, %v275_v25 }
 0x154   :  { %v312_v17 = vmul.f32 %v285_v4, %v272_v11 }
 0x155   :  { %v263_v5 = vpop.f32.mrf.mxu2 }
 0x156   :  { %v264_v22 = vadd.f32 %v263_v5, %v199_v3  ;;  %v319_v26 = vadd.f32 %v312_v17, %v311_v21 }
 0x157   :  { %v256_v8 = vpop.f32.mrf.mxu1 }
 0x158   :  { %v257_v10 = vadd.f32 %v256_v8, %v187_v58  ;;  %v276_v29 = vmax.f32 %v264_v22, 0.0 }
 0x15a   :  { %v273_v14 = vmax.f32 %v257_v10, 0.0  ;;  %v316_v38 = vmul.f32 %v301_v32, %v276_v29 }
 0x15c   :  { %v313_v23 = vmul.f32 %v289_v0, %v273_v14 }
 0x15d   :  { %v266_v15 = vpop.f32.mrf.mxu2 }
 0x15e   :  { %v267_v27 = vadd.f32 %v266_v15, %v203_v12  ;;  %v320_v30 = vadd.f32 %v319_v26, %v313_v23 }
 0x15f   :  { %v258_v19 = vpop.f32.mrf.mxu1 }
 0x160   :  { %v259_v24 = vadd.f32 %v258_v19, %v191_v59  ;;  %v277_v35 = vmax.f32 %v267_v27, 0.0 }
 0x162   :  { %v274_v28 = vmax.f32 %v259_v24, 0.0  ;;  %v317_v43 = vmul.f32 %v305_v41, %v277_v35 }
 0x164   :  { %v314_v31 = vmul.f32 %v293_v7, %v274_v28 }
 0x165   :  { %v268_v33 = vpop.f32.mrf.mxu2 }
 0x166   :  { %v321_v36 = vadd.f32 %v320_v30, %v314_v31  ;;  %v269_v37 = vadd.f32 %v268_v33, %v207_v20 }
 0x168   :  { %v322_v39 = vadd.f32 %v321_v36, %v315_v34  ;;  %v278_v40 = vmax.f32 %v269_v37, 0.0 }
 0x16a   :  { %v323_v44 = vadd.f32 %v322_v39, %v316_v38  ;;  %v318_v45 = vmul.f32 %v309_v42, %v278_v40 }
 0x16c   :  { %v324_v46 = vadd.f32 %v323_v44, %v317_v43 }
 0x16e   :  { %v325_v47 = vadd.f32 %v324_v46, %v318_v45 }
 0x170   :  { %v326_v48 = vrot.slane %v325_v47, 4 }
 0x172   :  { %v327_v49 = vadd.f32 %v326_v48, %v325_v47 }
 0x174   :  { %v328_v50 = vrot.slane %v327_v49, 2 }
 0x176   :  { %v329_v51 = vadd.f32 %v328_v50, %v327_v49 }
 0x178   :  { %v330_v52 = vrot.slane %v329_v51, 1 }
 0x17a   :  { %v331_v54 = vadd.f32 %v330_v52, %v329_v51 }
 0x17c   :  { %v334_v55 = vadd.f32 %v333_v53, %v331_v54 }
 0x17e   :  { %335 = vst [vmem:[#allocation3] sm:$0x1] %v334_v55 }
 0x17f   :  { %346 = dma.vmem_to_hbm [thread:$0]  %s342_s27, 16, %s344_s30, [#allocation4]  }
 0x180   :  { %457 = dma.done.wait [#allocation4], 16  }
 0x181   :  { %458 = vsyncadd [#allocation4], 4294967280 }
 0x182   :  { %351 = vsyncpa [#allocation4], 1 }

</bundles_post_ra>
